<compile_context>
chip_gen: v5e
topology: v5e:2x2
jax: 0.10.0
libtpu: 0.0.40
codegen_flags: <defaults>
</compile_context>

<pallas_src>
import jax
import jax.numpy as jnp
from jax.experimental import pallas as pl
from jax.experimental.pallas import tpu as pltpu

IN_FEATURES = 5
OUT_FEATURES = 3
SUBLANES = 8
MAX_TB = 8192  # batch-tile cap; ~16 MiB double-buffered VMEM at this size


def linear_kernel(x_ref, wt_ref, b_ref, o_ref):
    # x_ref: (tb, 5), wt_ref: (5, 3), b_ref: (1, 3), o_ref: (tb, 3)
    o_ref[...] = (
        jnp.dot(x_ref[...], wt_ref[...], preferred_element_type=jnp.float32)
        + b_ref[...]
    )


def _round_up(n, m):
    return ((n + m - 1) // m) * m


@jax.jit
def linear_forward(x, weight, bias):
    """x: (B, 5) f32, weight: (3, 5) f32, bias: (3,) f32 -> (B, 3) f32."""
    B = x.shape[0]

    # Hoist the constant weight transpose out of the kernel; keep the logical
    # (5, 3) / (1, 3) shapes (no HBM lane padding of the output path).
    wt = weight.astype(jnp.float32).T               # (5, 3)
    b2d = bias.astype(jnp.float32).reshape(1, OUT_FEATURES)  # (1, 3)

    # Batch tile: multiple of 8 sublanes, capped at MAX_TB, and clamped to
    # ~ceil(B/2) so the grid has >= 2 steps for v7x's two TensorCores.
    half = _round_up(max(1, pl.cdiv(B, 2)), SUBLANES)
    tb = max(SUBLANES, min(MAX_TB, half))
    grid = (pl.cdiv(B, tb),)   # ragged last block handled by Pallas masking

    return pl.pallas_call(
        linear_kernel,
        out_shape=jax.ShapeDtypeStruct((B, OUT_FEATURES), jnp.float32),
        grid=grid,
        in_specs=[
            pl.BlockSpec((tb, IN_FEATURES), lambda i: (i, 0)),          # x tile
            pl.BlockSpec((IN_FEATURES, OUT_FEATURES), lambda i: (0, 0)),  # W.T (resident)
            pl.BlockSpec((1, OUT_FEATURES), lambda i: (0, 0)),          # bias (resident)
        ],
        out_specs=pl.BlockSpec((tb, OUT_FEATURES), lambda i: (i, 0)),
        compiler_params=pltpu.CompilerParams(
            dimension_semantics=("parallel",),
            vmem_limit_bytes=32 * 1024 * 1024,  # keep v5e at the big-tile point
        ),
    )(x, wt, b2d)


if __name__ == "__main__":
    # Deterministic synthetic parameters (the pnnx .bin is not loaded; shapes
    # come from the module __init__: weight (3, 5), bias (3,)).
    kx, kw, kb = jax.random.split(jax.random.PRNGKey(0), 3)

    batch = 8
    x = jax.random.normal(kx, (batch, IN_FEATURES), dtype=jnp.float32)
    weight = jax.random.normal(kw, (OUT_FEATURES, IN_FEATURES), dtype=jnp.float32) * 0.1
    bias = jax.random.normal(kb, (OUT_FEATURES,), dtype=jnp.float32) * 0.1

    y = linear_forward(x, weight, bias)
    y = jax.block_until_ready(y)

    # Reference check in plain JAX (same semantics as torch nn.Linear).
    y_ref = x @ weight.T + bias
    assert y.shape == (batch, OUT_FEATURES)
    assert jnp.allclose(y, y_ref, atol=1e-5, rtol=1e-5)

    print("KERNEL_OK")
</pallas_src>

<mosaic_0001>
module attributes {stable_mosaic.version = 11 : i64} {
  func.func @linear_kernel(%arg0: i32, %arg1: memref<8x5xf32, #tpu.memory_space<vmem>>, %arg2: memref<5x3xf32, #tpu.memory_space<vmem>>, %arg3: memref<1x3xf32, #tpu.memory_space<vmem>>, %arg4: memref<8x3xf32, #tpu.memory_space<vmem>>) attributes {dimension_semantics = [#tpu.dimension_semantics<parallel>], iteration_bounds = array<i64: 1>, scalar_prefetch = 0 : i64, scratch_operands = 0 : i64, tpu.core_type = #tpu.core_type<tc>, window_params = [{transform_indices = @transform_0, window_bounds = array<i64: 8, 5>}, {pipeline_mode = #tpu.pipeline_mode<synchronous>, transform_indices = @transform_1, window_bounds = array<i64: 5, 3>}, {pipeline_mode = #tpu.pipeline_mode<synchronous>, transform_indices = @transform_2, window_bounds = array<i64: 1, 3>}, {transform_indices = @transform_3, window_bounds = array<i64: 8, 3>}]} {
    %c0 = arith.constant 0 : index
    %c0_0 = arith.constant 0 : index
    %0 = vector.load %arg1[%c0, %c0_0] : memref<8x5xf32, #tpu.memory_space<vmem>>, vector<8x5xf32>
    %c0_1 = arith.constant 0 : index
    %c0_2 = arith.constant 0 : index
    %1 = vector.load %arg2[%c0_1, %c0_2] : memref<5x3xf32, #tpu.memory_space<vmem>>, vector<5x3xf32>
    %cst = arith.constant dense<0.000000e+00> : vector<8x3xf32>
    %2 = tpu.matmul %0, %1, %cst {dimension_numbers = #tpu.dot_dimension_numbers<[1], [0], [0], [1], [0, 0, 1, 1], [], []>} : vector<8x5xf32>, vector<5x3xf32>, vector<8x3xf32> -> vector<8x3xf32>
    %c0_3 = arith.constant 0 : index
    %c0_4 = arith.constant 0 : index
    %3 = vector.load %arg3[%c0_3, %c0_4] : memref<1x3xf32, #tpu.memory_space<vmem>>, vector<1x3xf32>
    %4 = vector.broadcast %3 : vector<1x3xf32> to vector<8x3xf32>
    %5 = arith.addf %2, %4 : vector<8x3xf32>
    %c0_5 = arith.constant 0 : index
    %c0_6 = arith.constant 0 : index
    %6 = vector.load %arg4[%c0_5, %c0_6] : memref<8x3xf32, #tpu.memory_space<vmem>>, vector<8x3xf32>
    tpu.vector_store %arg4[%c0_5, %c0_6], %5 {strides = array<i32>} : memref<8x3xf32, #tpu.memory_space<vmem>>, vector<8x3xf32>,
    return
  }
  func.func @transform_0(%arg0: i32) -> (i32, i32) {
    %c0_i32 = arith.constant 0 : i32
    %c0_i32_0 = arith.constant 0 : i32
    return %arg0, %c0_i32 : i32, i32
  }
  func.func @transform_1(%arg0: i32) -> (i32, i32) {
    %c0_i32 = arith.constant 0 : i32
    %c0_i32_0 = arith.constant 0 : i32
    %c0_i32_1 = arith.constant 0 : i32
    return %c0_i32, %c0_i32_0 : i32, i32
  }
  func.func @transform_2(%arg0: i32) -> (i32, i32) {
    %c0_i32 = arith.constant 0 : i32
    %c0_i32_0 = arith.constant 0 : i32
    %c0_i32_1 = arith.constant 0 : i32
    return %c0_i32, %c0_i32_0 : i32, i32
  }
  func.func @transform_3(%arg0: i32) -> (i32, i32) {
    %c0_i32 = arith.constant 0 : i32
    %c0_i32_0 = arith.constant 0 : i32
    return %arg0, %c0_i32 : i32, i32
  }
}

</mosaic_0001>

<bundles_post_ra>
// kernel: linear_forward.1
= control target key start
LH: loop header
LB: loop body
LE: loop exit
PB: predicated region body
PF: predicated region fallthrough
CT: control target
= control target key end

     0   :  { %vm24_vm0 = vcmask 1044480   ;;  %vm20_vm1 = vcmask 39936   ;;  %vm48_vm2 = vcmask 23552   ;;  %s89_s1 = inlined_call_operand.vmem [shape: f32[5,3], index: 1, kind: input, shape index: {}]   ;;  %s90_s0 = inlined_call_operand.vmem [shape: f32[8,5], index: 0, kind: input, shape index: {}]   ;;  %s91_s2 = inlined_call_operand.vmem [shape: f32[1,3], index: 2, kind: input, shape index: {}]   ;;  %s92_s3 = inlined_call_operand.vmem [shape: f32[8,3], index: 3, kind: output, shape index: {}]  }
   0x1   :  { %v15_v0 = vld [vmem:[%s89_s1] sm:$0x1f] }
   0x2   :  { %v14_v1 = vld [vmem:[%s90_s0] sm:$0xff]  ;;  %54 = vmatpush.msk.msra.mxu0 %vm24_vm0, %v15_v0 }
   0x3   :  { %55 = vmatmul.msk.f32.vlgmr.msra.gmra.mxu0 %vm20_vm1, %v14_v1  ;;  %v56_v2 = vld [vmem:[%s91_s2] ss:$0 sm:$0xff] }
  0x80   :  { %v45_v3 = vpop.f32.mrf.mxu0 }
  0x81   :  { %v46_v4 = vadd.f32 %v56_v2, %v45_v3 }
  0x83   :  { %49 = vst.msk [vmem:[%s92_s3] sm:$0xff] %vm48_vm2, %v46_v4 }

</bundles_post_ra>
